<compile_context>
chip_gen: v5e
topology: v5e:2x2
jax: 0.10.0
libtpu: 0.0.40
codegen_flags: <defaults>
</compile_context>

<pallas_src>
import jax
import jax.numpy as jnp
from jax.experimental import pallas as pl
from jax.experimental.pallas import tpu as pltpu

# Fixed "parameters" from the module's __init__ (requires_grad=False).
SCALE = 255.0
MEAN = (0.485, 0.456, 0.406)
STD = (0.229, 0.224, 0.225)

_LANE = 128


def _normalize_kernel(a_ref, b_ref, x_ref, o_ref):
    # a_ref, b_ref: (R, 1) f32 per-row (= per-channel) multiplier / bias.
    # x_ref: (R, TL) input-dtype tile; o_ref: (R, TL) f32 tile.
    # Single cast + FMA on the loaded vregs; (R,1) broadcasts along lanes.
    o_ref[...] = x_ref[...].astype(jnp.float32) * a_ref[...] + b_ref[...]


def _pick_lane_tile(total_lanes, rows, in_itemsize,
                    vmem_budget_bytes=16 * 1024 * 1024):
    """Largest multiple-of-128 lane tile whose double-buffered in+out blocks
    fit within `vmem_budget_bytes` (safe under v5e/v6e/v7x scoped VMEM)."""
    sub_in = {1: 32, 2: 16, 4: 8}.get(in_itemsize, 8)   # sublane tiling per dtype
    rows_in = -(-rows // sub_in) * sub_in               # padded sublanes (input)
    rows_out = -(-rows // 8) * 8                        # padded sublanes (f32 out)
    bytes_per_lane = 2 * (rows_in * in_itemsize + rows_out * 4)  # x2 double-buffer
    tl = (vmem_budget_bytes // bytes_per_lane) // _LANE * _LANE
    tl = max(_LANE, tl)
    # No need to exceed the (lane-aligned) problem size.
    tl = min(tl, -(-total_lanes // _LANE) * _LANE)
    return int(tl)


def video_normalizer(video):
    """video: (A, B, H, 3), any dtype -> (B, 3, A, H) float32 (torch-equivalent)."""
    A, B, H, C = video.shape
    assert C == 3, "channel dim (last) must be 3"

    # Axis permutation (pure data movement) done ONCE at the original element
    # width -- no f32 upcast here.  For uint8 video this intermediate is 4x
    # smaller than before; the f32 cast happens inside the kernel.
    # TODO(synk): folding this permute into the kernel's input DMA (in-kernel
    # channel de-interleave) would remove one more 1-byte HBM pass.
    x = jnp.transpose(video, (1, 3, 0, 2))          # (B, 3, A, H), input dtype
    R, L = B * C, A * H
    x2 = x.reshape(R, L)                            # free view: lane-dense slab

    # (x / scale - mean) / std  ==  x * a + b, per channel.
    mean = jnp.asarray(MEAN, jnp.float32)
    std = jnp.asarray(STD, jnp.float32)
    a = 1.0 / (jnp.float32(SCALE) * std)            # (3,)
    b = -mean / std                                 # (3,)
    a_rows = jnp.tile(a, B)[:, None]                # (R, 1); row r -> channel r % 3
    b_rows = jnp.tile(b, B)[:, None]                # (R, 1)

    in_itemsize = jnp.dtype(video.dtype).itemsize
    tl = _pick_lane_tile(L, R, in_itemsize)
    grid = (pl.cdiv(L, tl),)

    n_elems = B * C * A * H
    bytes_accessed = n_elems * in_itemsize + n_elems * 4 + 2 * R * 4

    out2 = pl.pallas_call(
        _normalize_kernel,
        out_shape=jax.ShapeDtypeStruct((R, L), jnp.float32),
        grid=grid,
        in_specs=[
            pl.BlockSpec((R, 1), lambda i: (0, 0)),     # a_rows (resident)
            pl.BlockSpec((R, 1), lambda i: (0, 0)),     # b_rows (resident)
            pl.BlockSpec((R, tl), lambda i: (0, i)),    # input lane tile
        ],
        out_specs=pl.BlockSpec((R, tl), lambda i: (0, i)),
        compiler_params=pltpu.CompilerParams(
            dimension_semantics=("parallel",),
            vmem_limit_bytes=32 * 1024 * 1024,
        ),
        cost_estimate=pl.CostEstimate(
            flops=2 * n_elems,
            transcendentals=0,
            bytes_accessed=int(bytes_accessed),
        ),
    )(a_rows, b_rows, x2)

    return out2.reshape(B, C, A, H)


if __name__ == "__main__":
    key = jax.random.PRNGKey(0)
    # Small shapes consistent with the forward: input (A, B, H, C=3).
    A, B, H, C = 8, 2, 16, 3
    # Real video is uint8; the module's .float() cast happens inside the kernel.
    video = jax.random.randint(key, (A, B, H, C), 0, 256, dtype=jnp.int32).astype(
        jnp.uint8)

    out = jax.block_until_ready(video_normalizer(video))

    # Pure-JAX reference mirroring the torch forward exactly.
    mean = jnp.asarray(MEAN, jnp.float32)
    std = jnp.asarray(STD, jnp.float32)
    ref = (jnp.transpose(video, (1, 0, 2, 3)).astype(jnp.float32) / SCALE - mean) / std
    ref = jnp.transpose(ref, (0, 3, 1, 2))  # (B, 3, A, H)

    assert out.shape == (B, C, A, H), out.shape
    assert out.dtype == jnp.float32
    assert jnp.allclose(out, ref, atol=1e-5, rtol=1e-5), "mismatch vs reference"
    print("KERNEL_OK")
</pallas_src>

<mosaic_0001>
module attributes {stable_mosaic.version = 11 : i64} {
  func.func @_normalize_kernel(%arg0: i32, %arg1: memref<6x1xf32, #tpu.memory_space<vmem>>, %arg2: memref<6x1xf32, #tpu.memory_space<vmem>>, %arg3: memref<6x128xi8, #tpu.memory_space<vmem>>, %arg4: memref<6x128xf32, #tpu.memory_space<vmem>>) attributes {dimension_semantics = [#tpu.dimension_semantics<parallel>], iteration_bounds = array<i64: 1>, scalar_prefetch = 0 : i64, scratch_operands = 0 : i64, tpu.core_type = #tpu.core_type<tc>, window_params = [{pipeline_mode = #tpu.pipeline_mode<synchronous>, transform_indices = @transform_0, window_bounds = array<i64: 6, 1>}, {pipeline_mode = #tpu.pipeline_mode<synchronous>, transform_indices = @transform_1, window_bounds = array<i64: 6, 1>}, {transform_indices = @transform_2, window_bounds = array<i64: 6, 128>}, {transform_indices = @transform_3, window_bounds = array<i64: 6, 128>}]} {
    %c0 = arith.constant 0 : index
    %c0_0 = arith.constant 0 : index
    %0 = vector.load %arg3[%c0, %c0_0] : memref<6x128xi8, #tpu.memory_space<vmem>>, vector<6x128xi8>
    %1 = arith.uitofp %0 : vector<6x128xi8> to vector<6x128xf32>
    %c0_1 = arith.constant 0 : index
    %c0_2 = arith.constant 0 : index
    %2 = vector.load %arg1[%c0_1, %c0_2] : memref<6x1xf32, #tpu.memory_space<vmem>>, vector<6x1xf32>
    %3 = vector.broadcast %2 : vector<6x1xf32> to vector<6x128xf32>
    %4 = arith.mulf %1, %3 : vector<6x128xf32>
    %c0_3 = arith.constant 0 : index
    %c0_4 = arith.constant 0 : index
    %5 = vector.load %arg2[%c0_3, %c0_4] : memref<6x1xf32, #tpu.memory_space<vmem>>, vector<6x1xf32>
    %6 = vector.broadcast %5 : vector<6x1xf32> to vector<6x128xf32>
    %7 = arith.addf %4, %6 : vector<6x128xf32>
    %c0_5 = arith.constant 0 : index
    %c0_6 = arith.constant 0 : index
    %8 = vector.load %arg4[%c0_5, %c0_6] : memref<6x128xf32, #tpu.memory_space<vmem>>, vector<6x128xf32>
    tpu.vector_store %arg4[%c0_5, %c0_6], %7 {strides = array<i32>} : memref<6x128xf32, #tpu.memory_space<vmem>>, vector<6x128xf32>,
    return
  }
  func.func @transform_0(%arg0: i32) -> (i32, i32) {
    %c0_i32 = arith.constant 0 : i32
    %c0_i32_0 = arith.constant 0 : i32
    %c0_i32_1 = arith.constant 0 : i32
    return %c0_i32, %c0_i32_0 : i32, i32
  }
  func.func @transform_1(%arg0: i32) -> (i32, i32) {
    %c0_i32 = arith.constant 0 : i32
    %c0_i32_0 = arith.constant 0 : i32
    %c0_i32_1 = arith.constant 0 : i32
    return %c0_i32, %c0_i32_0 : i32, i32
  }
  func.func @transform_2(%arg0: i32) -> (i32, i32) {
    %c0_i32 = arith.constant 0 : i32
    %c0_i32_0 = arith.constant 0 : i32
    return %c0_i32, %arg0 : i32, i32
  }
  func.func @transform_3(%arg0: i32) -> (i32, i32) {
    %c0_i32 = arith.constant 0 : i32
    %c0_i32_0 = arith.constant 0 : i32
    return %c0_i32, %arg0 : i32, i32
  }
}

</mosaic_0001>

<bundles_post_ra>
// kernel: tpu_custom_call.1
= control target key start
LH: loop header
LB: loop body
LE: loop exit
PB: predicated region body
PF: predicated region fallthrough
CT: control target
= control target key end

     0   :  { %v79_v1 = vmov 0   ;;  %s113_s0 = inlined_call_operand.vmem [shape: f32[6,1], index: 0, kind: input, shape index: {}]   ;;  %s114_s1 = inlined_call_operand.vmem [shape: f32[6,1], index: 1, kind: input, shape index: {}]   ;;  %s115_s2 = inlined_call_operand.vmem [shape: u8[6,128], index: 2, kind: input, shape index: {}]   ;;  %s116_s3 = inlined_call_operand.hbm [shape: f32[6,128], index: 3, kind: output, shape index: {}]  }
   0x1   :  { %v19_v0 = vld [vmem:[%s113_s0] sm:$0x3f]  ;;  %52 = vset.pattern.permute.xlu0 %v79_v1 }
   0x2   :  { %8 = vsyncpa [#allocation3], 0  ;;  %22 = vperm.xlu0 %52, %v19_v0   ;;  %v26_v2 = vld [vmem:[%s114_s1] sm:$0x3f]  ;;  %s80_s18 = smov [#allocation2]   ;;  %s41_s21 = sshll.u32 %s116_s3, 4  ;;  %s42_s21 = int_to_ptr.hbm [resolvable:$true] %s41_s21 }
   0x3   :  { %v15_v3 = vld [vmem:[%s115_s2] sm:$0x3]  ;;  %s39_s19 = sshll.u32 %s80_s18, 4  ;;  %s40_s19 = int_to_ptr.vmem [resolvable:$true] %s39_s19 }
   0x4   :  { %v16_v4 = vunpack.c.0.s8 %v15_v3 }
   0x6   :  { %v17_v5 = vand.u32 255, %v16_v4 }
   0x8   :  { %v18_v7 = vcvt.s32.f32 %v17_v5 }
   0xa   :  { %29 = vperm.xlu0 %52, %v26_v2  }
  0x74   :  { %v23_v6 = vpop.permute.xlu0 %22 }
  0x75   :  { %v25_v8 = vmul.f32 %v23_v6, %v18_v7 }
  0x7c   :  { %v30_v9 = vpop.permute.xlu0 %29 }
  0x7d   :  { %v32_v10 = vadd.f32 %v30_v9, %v25_v8 }
  0x7f   :  { %33 = vst [vmem:[#allocation2] sm:$0x3f] %v32_v10 }
  0x80   :  { %44 = dma.vmem_to_hbm [thread:$0]  %s40_s19, 128, %s42_s21, [#allocation3]  }
  0x81   :  { %77 = dma.done.wait [#allocation3], 128  }
  0x82   :  { %78 = vsyncadd [#allocation3], 4294967168 }
  0x83   :  { %49 = vsyncpa [#allocation3], 1 }

</bundles_post_ra>
